<compile_context>
chip_gen: v6e
topology: v6e:2x2x1
jax: 0.10.0
libtpu: 0.0.40
codegen_flags: <defaults>
</compile_context>

<pallas_src>
import jax
import jax.numpy as jnp
import numpy as np
from jax.experimental import pallas as pl
from jax.experimental.pallas import tpu as pltpu  # noqa: F401  (TPU backend)

# Small synthetic sizes consistent with the module's shapes.
B, N, G, H = 2, 8, 4, 32          # batch, objects, goal-predicates, hidden_size
NUM_CLASSES = 16
H2 = 2 * H                        # GoalEncoder output dim (2*hidden_size) = 64
H4 = 4 * H                        # cat([obj_emb, loc_emb]) dim = 128

# Row offsets of each weight matrix inside the packed [W_ROWS, H2] slab.
OFF_G1 = 0                        # wg1:  [4H, 2H]
OFF_G2 = OFF_G1 + H4              # wg2:  [2H, 2H]
OFF_A1 = OFF_G2 + H2              # wa1|wo1 concat: [2H, 2H]
OFF_A2 = OFF_A1 + H2              # blockdiag(wa2, wo2): [2H, 2H]
OFF_C1 = OFF_A2 + H2              # wc1 in cols 0:H; wc2 in rows 0:H, cols H:2H
W_ROWS = OFF_C1 + H2              # 384
# Row indices inside the packed [8, H2] bias slab.
BG1, BG2, BA1, BA2, BC1, BC2 = 0, 1, 2, 3, 4, 5

# Row offsets inside the packed [B*G + N*B, 1] mask slab.
OFF_MG = 0                        # goal-pred mask rows, [B*G, 1]
OFF_MV = B * G                    # visible-object mask rows (object-major), [N*B, 1]


def goal_attention_kernel(objloc_ref, feat_ref, masks_ref, w_ref, b_ref,
                          ctx_out_ref, obj_out_ref):
    f32 = jnp.float32

    # --- GoalEncoder: Linear(4H,2H)+ReLU -> Linear(2H,2H)+ReLU -> masked sum ---
    # objloc_ref is [B*G, 4H]  (K = 128, one MXU contraction pass)
    h = jnp.dot(objloc_ref[...], w_ref[OFF_G1:OFF_G1 + H4, :],
                preferred_element_type=f32) + b_ref[BG1:BG1 + 1, :]
    h = jnp.maximum(h, 0.0)
    h = jnp.dot(h, w_ref[OFF_G2:OFF_G2 + H2, :],
                preferred_element_type=f32) + b_ref[BG2:BG2 + 1, :]
    h = jnp.maximum(h, 0.0)                                     # [B*G, 2H]
    h = h * masks_ref[OFF_MG:OFF_MG + B * G, :]                 # mask goal preds
    goal = jnp.sum(h.reshape(B, G, H2), axis=1)                 # [B, 2H]

    # --- fused fc_att_action | fc_att_object (packed + block-diagonal W2) ---
    a = jnp.maximum(
        jnp.dot(goal, w_ref[OFF_A1:OFF_A1 + H2, :],
                preferred_element_type=f32) + b_ref[BA1:BA1 + 1, :], 0.0)
    a = jnp.dot(a, w_ref[OFF_A2:OFF_A2 + H2, :],
                preferred_element_type=f32) + b_ref[BA2:BA2 + 1, :]
    att = 1.0 / (1.0 + jnp.exp(-a))                             # exact sigmoid, [B, 2H]
    gm_action = att[:, 0:H]                                     # [B, H]
    gm_object = att[:, H:H2]                                    # [B, H]

    # --- masked average context over visible objects (denominator in-kernel) ---
    feat = feat_ref[...]                                        # [N*B, H], object-major
    maskv = masks_ref[OFF_MV:OFF_MV + N * B, :]                 # [N*B, 1]
    num = jnp.sum((feat * maskv).reshape(N, B, H), axis=0)      # [B, H]
    den = 1e-9 + jnp.sum(maskv.reshape(N, B, 1), axis=0)        # [B, 1]
    ctx = num / den                                             # exact; 0/eps stays 0

    ctx_goal = gm_action * ctx                                  # [B, H] == r_context_vec

    # --- object_context_combine(cat([gmo*feat, r_ctx repeated], -1)) ---
    # First matmul split to avoid the lane concatenate:
    #   cat([gated, ctx_rows]) @ Wc1 == gated @ Wc1[:H] + ctx_rows @ Wc1[H:]
    gated = jnp.tile(gm_object, (N, 1)) * feat                  # [N*B, H]
    ctx_proj = jnp.dot(ctx_goal, w_ref[OFF_C1 + H:OFF_C1 + H2, 0:H],
                       preferred_element_type=f32) + b_ref[BC1:BC1 + 1, 0:H]   # [B, H]
    c = jnp.dot(gated, w_ref[OFF_C1:OFF_C1 + H, 0:H],
                preferred_element_type=f32) + jnp.tile(ctx_proj, (N, 1))       # [N*B, H]
    c = jnp.maximum(c, 0.0)
    c = jnp.dot(c, w_ref[OFF_C1:OFF_C1 + H, H:H2],
                preferred_element_type=f32) + b_ref[BC2:BC2 + 1, 0:H]          # [N*B, H]

    # --- two plain stores; split/reshape happens in the wrapper ---
    ctx_out_ref[...] = ctx_goal.astype(ctx_out_ref.dtype)
    obj_out_ref[...] = c.astype(obj_out_ref.dtype)


def pack_params(p):
    """Pack the 16 weight/bias arrays into one weight slab and one bias slab."""
    w_att1 = jnp.concatenate([p["wa1"], p["wo1"]], axis=1)            # [2H, 2H]
    w_att2 = jnp.zeros((H2, H2), jnp.float32)
    w_att2 = w_att2.at[0:H, 0:H].set(p["wa2"]).at[H:H2, H:H2].set(p["wo2"])
    b_att1 = jnp.concatenate([p["ba1"], p["bo1"]], axis=1)            # [1, 2H]
    b_att2 = jnp.concatenate([p["ba2"], p["bo2"]], axis=1)            # [1, 2H]

    # wc1 [2H, H] occupies cols 0:H; wc2 [H, H] occupies rows 0:H of cols H:2H.
    wc_block = jnp.concatenate(
        [p["wc1"],
         jnp.concatenate([p["wc2"], jnp.zeros((H, H), jnp.float32)], axis=0)],
        axis=1)                                                        # [2H, 2H]

    def pad_cols(w):
        return jnp.pad(w, ((0, 0), (0, H2 - w.shape[1])))

    w_all = jnp.concatenate([
        p["wg1"],                      # rows   0:128
        p["wg2"],                      # rows 128:192
        w_att1,                        # rows 192:256
        w_att2,                        # rows 256:320
        wc_block,                      # rows 320:384  (wc1 | wc2)
    ], axis=0).astype(jnp.float32)     # [384, 64]

    b_all = jnp.concatenate([
        p["bg1"], p["bg2"], b_att1, b_att2,
        pad_cols(p["bc1"]), pad_cols(p["bc2"]),
        jnp.zeros((2, H2), jnp.float32),
    ], axis=0).astype(jnp.float32)     # [8, 64]

    return {"emb": p["emb"], "w_all": w_all, "b_all": b_all}


# Advisory cost estimate for XLA scheduling around the tiny custom call.
_FLOPS = 2 * (B * G * H4 * H2 + B * G * H2 * H2 + 2 * B * H2 * H2
              + N * B * H * H + B * H * H + N * B * H * H)
_BYTES = 4 * (W_ROWS * H2 + 8 * H2 + B * G * H4 + N * B * H
              + (B * G + N * B) + B * H + N * B * H)
_TRANS = B * H2  # sigmoid exps


def goal_attention_forward(inputs, features_obj, rnn_hxs, packed):
    """Glue: embedding gather + layout prep + single gridless Pallas call.

    Returns (r_context_vec, r_object_vec_comb, rnn_hxs)."""
    emb = packed["emb"]
    obj_emb = jnp.take(emb, inputs["target_obj_class"], axis=0)       # [B, G, 2H]
    loc_emb = jnp.take(emb, inputs["target_loc_class"], axis=0)       # [B, G, 2H]
    obj_loc = jnp.concatenate([obj_emb, loc_emb], axis=-1).reshape(B * G, H4)

    # Object-major flattening: row n*B + b  <->  features_obj[b, n]
    feat_om = jnp.transpose(features_obj, (1, 0, 2)).reshape(N * B, H)

    # Pack both tiny mask columns into one operand (one DMA instead of two/three).
    maskg = inputs["mask_goal_pred"].astype(jnp.float32).reshape(B * G, 1)
    maskv_om = jnp.transpose(
        inputs["mask_object"].astype(jnp.float32), (1, 0)).reshape(N * B, 1)
    masks_all = jnp.concatenate([maskg, maskv_om], axis=0)             # [24, 1]

    ctx_goal, c = pl.pallas_call(
        goal_attention_kernel,
        out_shape=(jax.ShapeDtypeStruct((B, H), jnp.float32),
                   jax.ShapeDtypeStruct((N * B, H), jnp.float32)),
        cost_estimate=pl.CostEstimate(flops=_FLOPS, transcendentals=_TRANS,
                                      bytes_accessed=_BYTES),
    )(obj_loc, feat_om, masks_all, packed["w_all"], packed["b_all"])

    r_ctx = ctx_goal                                                   # [B, H]
    r_obj = jnp.transpose(c.reshape(N, B, H), (1, 0, 2))               # [B, N, H]
    return r_ctx, r_obj, rnn_hxs


def init_params(key):
    ks = jax.random.split(key, 10)

    def lin(k, din, dout):
        kw, kb = jax.random.split(k)
        w = jax.random.normal(kw, (din, dout), jnp.float32) / np.sqrt(din)
        b = 0.01 * jax.random.normal(kb, (1, dout), jnp.float32)
        return w, b

    p = {}
    p["emb"] = 0.1 * jax.random.normal(ks[0], (NUM_CLASSES, H2), jnp.float32)
    p["wg1"], p["bg1"] = lin(ks[1], H4, H2)
    p["wg2"], p["bg2"] = lin(ks[2], H2, H2)
    p["wa1"], p["ba1"] = lin(ks[3], H2, H)
    p["wa2"], p["ba2"] = lin(ks[4], H, H)
    p["wo1"], p["bo1"] = lin(ks[5], H2, H)
    p["wo2"], p["bo2"] = lin(ks[6], H2, H)[0][:H, :], lin(ks[6], H, H)[1]
    # (re-do cleanly: wo2 is [H, H])
    p["wo2"], p["bo2"] = lin(ks[6], H, H)
    p["wc1"], p["bc1"] = lin(ks[7], H2, H)
    p["wc2"], p["bc2"] = lin(ks[8], H, H)
    return p


def reference_forward(inputs, features_obj, params):
    """Pure-JAX reference mirroring the PyTorch forward (non-recurrent)."""
    emb = params["emb"]
    obj_e = jnp.take(emb, inputs["target_obj_class"], axis=0)
    loc_e = jnp.take(emb, inputs["target_loc_class"], axis=0)
    obj_loc = jnp.concatenate([obj_e, loc_e], axis=2)                       # [B,G,4H]
    h = jax.nn.relu(obj_loc @ params["wg1"] + params["bg1"])
    h = jax.nn.relu(h @ params["wg2"] + params["bg2"])                      # [B,G,2H]
    goal = (h * inputs["mask_goal_pred"][..., None]).sum(1)                 # [B,2H]

    mv = inputs["mask_object"][..., None]
    ctx = (features_obj * mv).sum(1) / (1e-9 + mv.sum(1))                   # [B,H]

    a = jax.nn.relu(goal @ params["wa1"] + params["ba1"]) @ params["wa2"] + params["ba2"]
    gma = jax.nn.sigmoid(a)
    o = jax.nn.relu(goal @ params["wo1"] + params["bo1"]) @ params["wo2"] + params["bo2"]
    gmo = jax.nn.sigmoid(o)

    r_ctx = gma * ctx                                                       # [B,H]
    r_obj = jnp.concatenate(
        [gmo[:, None, :] * features_obj,
         jnp.broadcast_to(r_ctx[:, None, :], features_obj.shape)], axis=2)  # [B,N,2H]
    c = jax.nn.relu(r_obj @ params["wc1"] + params["bc1"]) @ params["wc2"] + params["bc2"]
    return r_ctx, c


if __name__ == "__main__":
    key = jax.random.PRNGKey(0)
    kp, kd = jax.random.split(key)
    params = init_params(kp)
    packed = pack_params(params)

    kds = jax.random.split(kd, 6)
    features_obj = jax.random.normal(kds[0], (B, N, H), jnp.float32)
    inputs = {
        "mask_object": (jax.random.uniform(kds[1], (B, N)) > 0.3).astype(jnp.float32),
        "target_obj_class": jax.random.randint(kds[2], (B, G), 0, NUM_CLASSES),
        "target_loc_class": jax.random.randint(kds[3], (B, G), 0, NUM_CLASSES),
        "mask_goal_pred": (jax.random.uniform(kds[4], (B, G)) > 0.5).astype(jnp.float32),
    }
    rnn_hxs = jnp.zeros((B, 1), jnp.float32)

    r_ctx, r_obj, rnn_hxs_out = goal_attention_forward(
        inputs, features_obj, rnn_hxs, packed)
    jax.block_until_ready((r_ctx, r_obj, rnn_hxs_out))

    ref_ctx, ref_obj = reference_forward(inputs, features_obj, params)
    np.testing.assert_allclose(np.asarray(r_ctx), np.asarray(ref_ctx),
                               rtol=2e-3, atol=2e-3)
    np.testing.assert_allclose(np.asarray(r_obj), np.asarray(ref_obj),
                               rtol=2e-3, atol=2e-3)

    print("KERNEL_OK")
</pallas_src>

<mosaic_0001>
module attributes {stable_mosaic.version = 11 : i64} {
  func.func @goal_attention_kernel(%arg0: memref<8x128xf32, #tpu.memory_space<vmem>>, %arg1: memref<16x32xf32, #tpu.memory_space<vmem>>, %arg2: memref<24x1xf32, #tpu.memory_space<vmem>>, %arg3: memref<384x64xf32, #tpu.memory_space<vmem>>, %arg4: memref<8x64xf32, #tpu.memory_space<vmem>>, %arg5: memref<2x32xf32, #tpu.memory_space<vmem>>, %arg6: memref<16x32xf32, #tpu.memory_space<vmem>>) attributes {dimension_semantics = [], scalar_prefetch = 0 : i64, scratch_operands = 0 : i64, tpu.core_type = #tpu.core_type<tc>} {
    %c0 = arith.constant 0 : index
    %c0_0 = arith.constant 0 : index
    %0 = vector.load %arg0[%c0, %c0_0] : memref<8x128xf32, #tpu.memory_space<vmem>>, vector<8x128xf32>
    %c0_1 = arith.constant 0 : index
    %c0_2 = arith.constant 0 : index
    %1 = vector.load %arg3[%c0_1, %c0_2] : memref<384x64xf32, #tpu.memory_space<vmem>>, vector<128x64xf32>
    %cst = arith.constant dense<0.000000e+00> : vector<8x64xf32>
    %2 = tpu.matmul %0, %1, %cst {dimension_numbers = #tpu.dot_dimension_numbers<[1], [0], [0], [1], [0, 0, 1, 1], [], []>} : vector<8x128xf32>, vector<128x64xf32>, vector<8x64xf32> -> vector<8x64xf32>
    %c0_3 = arith.constant 0 : index
    %c0_4 = arith.constant 0 : index
    %3 = vector.load %arg4[%c0_3, %c0_4] : memref<8x64xf32, #tpu.memory_space<vmem>>, vector<1x64xf32>
    %4 = vector.broadcast %3 : vector<1x64xf32> to vector<8x64xf32>
    %5 = arith.addf %2, %4 : vector<8x64xf32>
    %cst_5 = arith.constant 0.000000e+00 : f32
    %6 = vector.broadcast %cst_5 : f32 to vector<8x64xf32>
    %7 = arith.maximumf %5, %6 : vector<8x64xf32>
    %c128 = arith.constant 128 : index
    %c0_6 = arith.constant 0 : index
    %8 = vector.load %arg3[%c128, %c0_6] : memref<384x64xf32, #tpu.memory_space<vmem>>, vector<64x64xf32>
    %cst_7 = arith.constant dense<0.000000e+00> : vector<8x64xf32>
    %9 = tpu.matmul %7, %8, %cst_7 {dimension_numbers = #tpu.dot_dimension_numbers<[1], [0], [0], [1], [0, 0, 1, 1], [], []>} : vector<8x64xf32>, vector<64x64xf32>, vector<8x64xf32> -> vector<8x64xf32>
    %c1 = arith.constant 1 : index
    %c0_8 = arith.constant 0 : index
    %10 = vector.load %arg4[%c1, %c0_8] : memref<8x64xf32, #tpu.memory_space<vmem>>, vector<1x64xf32>
    %11 = vector.broadcast %10 : vector<1x64xf32> to vector<8x64xf32>
    %12 = arith.addf %9, %11 : vector<8x64xf32>
    %cst_9 = arith.constant 0.000000e+00 : f32
    %13 = vector.broadcast %cst_9 : f32 to vector<8x64xf32>
    %14 = arith.maximumf %12, %13 : vector<8x64xf32>
    %c0_10 = arith.constant 0 : index
    %c0_11 = arith.constant 0 : index
    %15 = vector.load %arg2[%c0_10, %c0_11] : memref<24x1xf32, #tpu.memory_space<vmem>>, vector<8x1xf32>
    %16 = vector.broadcast %15 : vector<8x1xf32> to vector<8x64xf32>
    %17 = arith.mulf %14, %16 : vector<8x64xf32>
    %18 = vector.shape_cast %17 : vector<8x64xf32> to vector<2x4x64xf32>
    %cst_12 = arith.constant dense<0.000000e+00> : vector<2x64xf32>
    %19 = vector.multi_reduction <add>, %18, %cst_12 [1] : vector<2x4x64xf32> to vector<2x64xf32>
    %c192 = arith.constant 192 : index
    %c0_13 = arith.constant 0 : index
    %20 = vector.load %arg3[%c192, %c0_13] : memref<384x64xf32, #tpu.memory_space<vmem>>, vector<64x64xf32>
    %cst_14 = arith.constant dense<0.000000e+00> : vector<2x64xf32>
    %21 = tpu.matmul %19, %20, %cst_14 {dimension_numbers = #tpu.dot_dimension_numbers<[1], [0], [0], [1], [0, 0, 1, 1], [], []>} : vector<2x64xf32>, vector<64x64xf32>, vector<2x64xf32> -> vector<2x64xf32>
    %c2 = arith.constant 2 : index
    %c0_15 = arith.constant 0 : index
    %22 = vector.load %arg4[%c2, %c0_15] : memref<8x64xf32, #tpu.memory_space<vmem>>, vector<1x64xf32>
    %23 = vector.broadcast %22 : vector<1x64xf32> to vector<2x64xf32>
    %24 = arith.addf %21, %23 : vector<2x64xf32>
    %cst_16 = arith.constant 0.000000e+00 : f32
    %25 = vector.broadcast %cst_16 : f32 to vector<2x64xf32>
    %26 = arith.maximumf %24, %25 : vector<2x64xf32>
    %c256 = arith.constant 256 : index
    %c0_17 = arith.constant 0 : index
    %27 = vector.load %arg3[%c256, %c0_17] : memref<384x64xf32, #tpu.memory_space<vmem>>, vector<64x64xf32>
    %cst_18 = arith.constant dense<0.000000e+00> : vector<2x64xf32>
    %28 = tpu.matmul %26, %27, %cst_18 {dimension_numbers = #tpu.dot_dimension_numbers<[1], [0], [0], [1], [0, 0, 1, 1], [], []>} : vector<2x64xf32>, vector<64x64xf32>, vector<2x64xf32> -> vector<2x64xf32>
    %c3 = arith.constant 3 : index
    %c0_19 = arith.constant 0 : index
    %29 = vector.load %arg4[%c3, %c0_19] : memref<8x64xf32, #tpu.memory_space<vmem>>, vector<1x64xf32>
    %30 = vector.broadcast %29 : vector<1x64xf32> to vector<2x64xf32>
    %31 = arith.addf %28, %30 : vector<2x64xf32>
    %cst_20 = arith.constant 0.000000e+00 : f32
    %32 = vector.broadcast %cst_20 : f32 to vector<2x64xf32>
    %33 = arith.subf %32, %31 : vector<2x64xf32>
    %34 = math.exp %33 : vector<2x64xf32>
    %cst_21 = arith.constant 1.000000e+00 : f32
    %35 = vector.broadcast %cst_21 : f32 to vector<2x64xf32>
    %36 = arith.addf %35, %34 : vector<2x64xf32>
    %cst_22 = arith.constant 1.000000e+00 : f32
    %37 = vector.broadcast %cst_22 : f32 to vector<2x64xf32>
    %38 = arith.divf %37, %36 : vector<2x64xf32>
    %39 = vector.extract_strided_slice %38 {offsets = [0, 0], sizes = [2, 32], strides = [1, 1]} : vector<2x64xf32> to vector<2x32xf32>
    %40 = vector.extract_strided_slice %38 {offsets = [0, 32], sizes = [2, 32], strides = [1, 1]} : vector<2x64xf32> to vector<2x32xf32>
    %c0_23 = arith.constant 0 : index
    %c0_24 = arith.constant 0 : index
    %41 = vector.load %arg1[%c0_23, %c0_24] : memref<16x32xf32, #tpu.memory_space<vmem>>, vector<16x32xf32>
    %c8 = arith.constant 8 : index
    %c0_25 = arith.constant 0 : index
    %42 = vector.load %arg2[%c8, %c0_25] : memref<24x1xf32, #tpu.memory_space<vmem>>, vector<16x1xf32>
    %43 = vector.broadcast %42 : vector<16x1xf32> to vector<16x32xf32>
    %44 = arith.mulf %41, %43 : vector<16x32xf32>
    %45 = vector.shape_cast %44 : vector<16x32xf32> to vector<8x2x32xf32>
    %cst_26 = arith.constant dense<0.000000e+00> : vector<2x32xf32>
    %46 = vector.multi_reduction <add>, %45, %cst_26 [0] : vector<8x2x32xf32> to vector<2x32xf32>
    %47 = vector.shape_cast %42 : vector<16x1xf32> to vector<8x2x1xf32>
    %cst_27 = arith.constant dense<0.000000e+00> : vector<2x1xf32>
    %48 = vector.multi_reduction <add>, %47, %cst_27 [0] : vector<8x2x1xf32> to vector<2x1xf32>
    %cst_28 = arith.constant 9.99999971E-10 : f32
    %49 = vector.broadcast %cst_28 : f32 to vector<2x1xf32>
    %50 = arith.addf %49, %48 : vector<2x1xf32>
    %51 = vector.broadcast %50 : vector<2x1xf32> to vector<2x32xf32>
    %52 = arith.divf %46, %51 : vector<2x32xf32>
    %53 = arith.mulf %39, %52 : vector<2x32xf32>
    %54 = tpu.concatenate %40, %40, %40, %40, %40, %40, %40, %40 in 0 : vector<2x32xf32>, vector<2x32xf32>, vector<2x32xf32>, vector<2x32xf32>, vector<2x32xf32>, vector<2x32xf32>, vector<2x32xf32>, vector<2x32xf32> -> vector<16x32xf32>
    %55 = arith.mulf %54, %41 : vector<16x32xf32>
    %c352 = arith.constant 352 : index
    %c0_29 = arith.constant 0 : index
    %56 = vector.load %arg3[%c352, %c0_29] : memref<384x64xf32, #tpu.memory_space<vmem>>, vector<32x32xf32>
    %cst_30 = arith.constant dense<0.000000e+00> : vector<2x32xf32>
    %57 = tpu.matmul %53, %56, %cst_30 {dimension_numbers = #tpu.dot_dimension_numbers<[1], [0], [0], [1], [0, 0, 1, 1], [], []>} : vector<2x32xf32>, vector<32x32xf32>, vector<2x32xf32> -> vector<2x32xf32>
    %c4 = arith.constant 4 : index
    %c0_31 = arith.constant 0 : index
    %58 = vector.load %arg4[%c4, %c0_31] : memref<8x64xf32, #tpu.memory_space<vmem>>, vector<1x32xf32>
    %59 = vector.broadcast %58 : vector<1x32xf32> to vector<2x32xf32>
    %60 = arith.addf %57, %59 : vector<2x32xf32>
    %c320 = arith.constant 320 : index
    %c0_32 = arith.constant 0 : index
    %61 = vector.load %arg3[%c320, %c0_32] : memref<384x64xf32, #tpu.memory_space<vmem>>, vector<32x32xf32>
    %cst_33 = arith.constant dense<0.000000e+00> : vector<16x32xf32>
    %62 = tpu.matmul %55, %61, %cst_33 {dimension_numbers = #tpu.dot_dimension_numbers<[1], [0], [0], [1], [0, 0, 1, 1], [], []>} : vector<16x32xf32>, vector<32x32xf32>, vector<16x32xf32> -> vector<16x32xf32>
    %63 = tpu.concatenate %60, %60, %60, %60, %60, %60, %60, %60 in 0 : vector<2x32xf32>, vector<2x32xf32>, vector<2x32xf32>, vector<2x32xf32>, vector<2x32xf32>, vector<2x32xf32>, vector<2x32xf32>, vector<2x32xf32> -> vector<16x32xf32>
    %64 = arith.addf %62, %63 : vector<16x32xf32>
    %cst_34 = arith.constant 0.000000e+00 : f32
    %65 = vector.broadcast %cst_34 : f32 to vector<16x32xf32>
    %66 = arith.maximumf %64, %65 : vector<16x32xf32>
    %c320_35 = arith.constant 320 : index
    %c32 = arith.constant 32 : index
    %67 = vector.load %arg3[%c320_35, %c32] : memref<384x64xf32, #tpu.memory_space<vmem>>, vector<32x32xf32>
    %cst_36 = arith.constant dense<0.000000e+00> : vector<16x32xf32>
    %68 = tpu.matmul %66, %67, %cst_36 {dimension_numbers = #tpu.dot_dimension_numbers<[1], [0], [0], [1], [0, 0, 1, 1], [], []>} : vector<16x32xf32>, vector<32x32xf32>, vector<16x32xf32> -> vector<16x32xf32>
    %c5 = arith.constant 5 : index
    %c0_37 = arith.constant 0 : index
    %69 = vector.load %arg4[%c5, %c0_37] : memref<8x64xf32, #tpu.memory_space<vmem>>, vector<1x32xf32>
    %70 = vector.broadcast %69 : vector<1x32xf32> to vector<16x32xf32>
    %71 = arith.addf %68, %70 : vector<16x32xf32>
    %c0_38 = arith.constant 0 : index
    %c0_39 = arith.constant 0 : index
    %72 = vector.load %arg5[%c0_38, %c0_39] : memref<2x32xf32, #tpu.memory_space<vmem>>, vector<2x32xf32>
    tpu.vector_store %arg5[%c0_38, %c0_39], %53 {strides = array<i32>} : memref<2x32xf32, #tpu.memory_space<vmem>>, vector<2x32xf32>,
    %c0_40 = arith.constant 0 : index
    %c0_41 = arith.constant 0 : index
    %73 = vector.load %arg6[%c0_40, %c0_41] : memref<16x32xf32, #tpu.memory_space<vmem>>, vector<16x32xf32>
    tpu.vector_store %arg6[%c0_40, %c0_41], %71 {strides = array<i32>} : memref<16x32xf32, #tpu.memory_space<vmem>>, vector<16x32xf32>,
    return
  }
}

</mosaic_0001>

<bundles_post_ra>
// kernel: tpu_custom_call.1
= control target key start
LH: loop header
LB: loop body
LE: loop exit
PB: predicated region body
PF: predicated region fallthrough
CT: control target
= control target key end

     0   :  { %12 = vsyncpa [#allocation3], 0  ;;  %v1161_v1 = vmov 0.0   ;;  %vm1162_vm0 = vmmov 0   ;;  %s1505_s0 = inlined_call_operand.vmem [shape: f32[8,128], index: 0, kind: input, shape index: {}]   ;;  %s1506_s1 = inlined_call_operand.vmem [shape: f32[16,32], index: 1, kind: input, shape index: {}]   ;;  %s1507_s2 = inlined_call_operand.vmem [shape: f32[24,1], index: 2, kind: input, shape index: {}]   ;;  %s1508_s3 = inlined_call_operand.vmem [shape: f32[384,64], index: 3, kind: input, shape index: {}]   ;;  %s1509_s4 = inlined_call_operand.vmem [shape: f32[8,64], index: 4, kind: input, shape index: {}]   ;;  %s1510_s5 = inlined_call_operand.hbm [shape: f32[2,32], index: 5, kind: output, shape index: {0}]   ;;  %s1511_s6 = inlined_call_operand.hbm [shape: f32[16,32], index: 6, kind: output, shape index: {1}]  }
   0x1   :  { %v40_v0 = vld [vmem:[%s1508_s3 + $0x78] sm:$0xff]  ;;  %972 = vmatprep.subr.mxu0 %v1161_v1  ;;  %v39_v2 = vld [vmem:[%s1508_s3 + $0x70] sm:$0xff]  ;;  %1004 = vmatprep.mubr.msk.f32.mxu0 %vm1162_vm0, %v1161_v1  ;;  %v38_v3 = vld [vmem:[%s1508_s3 + $0x68] sm:$0xff] }
   0x2   :  { %973 = vmatpush3.msra.mxu0 %v40_v0  ;;  %1007 = vmatprep.subr.mxu1 %v1161_v1  ;;  %v37_v4 = vld [vmem:[%s1508_s3 + $0x60] sm:$0xff]  ;;  %v124_v5 = vld [vmem:[%s1508_s3 + $0xb8] sm:$0xff]  ;;  %v123_v6 = vld [vmem:[%s1508_s3 + $0xb0] sm:$0xff] }
   0x3   :  { %974 = vmatprep.subr.mxu0 %v1161_v1  ;;  %1023 = vmatprep.mubr.msk.f32.mxu1 %vm1162_vm0, %v1161_v1  ;;  %v36_v7 = vld [vmem:[%s1508_s3 + $0x58] sm:$0xff]  ;;  %v122_v8 = vld [vmem:[%s1508_s3 + $0xa8] sm:$0xff] }
   0x4   :  { %975 = vmatpush3.msra.mxu0 %v39_v2  ;;  %1008 = vmatpush3.msra.mxu1 %v124_v5 }
   0x5   :  { %976 = vmatprep.subr.mxu0 %v1161_v1  ;;  %1009 = vmatprep.subr.mxu1 %v1161_v1 }
   0x6   :  { %977 = vmatpush3.msra.mxu0 %v38_v3 }
   0x7   :  { %978 = vmatprep.subr.mxu0 %v1161_v1 }
   0x8   :  { %13 = vsyncpa [#allocation5], 0  ;;  %979 = vmatpush3.msra.mxu0 %v37_v4  ;;  %1010 = vmatpush3.msra.mxu1 %v123_v6  ;;  %v35_v9 = vld [vmem:[%s1508_s3 + $0x50] sm:$0xff]  ;;  %v121_v10 = vld [vmem:[%s1508_s3 + $0xa0] sm:$0xff]  ;;  %v434_v28 = vlaneseq  ;;  %s1163_s26 = smov 32   ;;  %v1164_v29 = vmov 0  }
   0x9   :  { %980 = vmatprep.subr.mxu0 %v1161_v1  ;;  %1011 = vmatprep.subr.mxu1 %v1161_v1  ;;  %v34_v11 = vld [vmem:[%s1508_s3 + $0x48] sm:$0xff]  ;;  %v120_v12 = vld [vmem:[%s1508_s3 + $0x98] sm:$0xff]  ;;  %v33_v13 = vld [vmem:[%s1508_s3 + $0x40] sm:$0xff]  ;;  %v1165_v30 = vmov 1983009808   ;;  %vm530_vm1 = vcmask 1024  }
   0xa   :  { %981 = vmatpush3.msra.mxu0 %v36_v7  ;;  %1012 = vmatpush3.msra.mxu1 %v122_v8  ;;  %v32_v14 = vld [vmem:[%s1508_s3 + $0x38] sm:$0xff]  ;;  %v31_v15 = vld [vmem:[%s1508_s3 + $0x30] sm:$0xff]  ;;  %v30_v16 = vld [vmem:[%s1508_s3 + $0x28] sm:$0xff]  ;;  %v432_v31 = vunpack.c.l.s4 %v1165_v30  ;;  %v435_v32 = vshrl.u32 %v434_v28, 7  ;;  %vm130_vm2 = vcmask 523264   ;;  %vm215_vm3 = vcmask 519168  }
   0xb   :  { %982 = vmatprep.subr.mxu0 %v1161_v1  ;;  %1013 = vmatprep.subr.mxu1 %v1161_v1  ;;  %v29_v17 = vld [vmem:[%s1508_s3 + $0x20] sm:$0xff]  ;;  %v28_v18 = vld [vmem:[%s1508_s3 + $0x18] sm:$0xff]  ;;  %v27_v19 = vld [vmem:[%s1508_s3 + $0x10] sm:$0xff]  ;;  %vm245_vm4 = vcmask 1041409   ;;  %vm472_vm5 = vcmask 254976   ;;  %vm587_vm6 = vcmask 261120  }
   0xc   :  { %983 = vmatpush3.msra.mxu0 %v35_v9  ;;  %1014 = vmatpush3.msra.mxu1 %v121_v10  ;;  %v26_v20 = vld [vmem:[%s1508_s3 + $0x8] sm:$0xff]  ;;  %v25_v21 = vld [vmem:[%s1508_s3] sm:$0xff]  ;;  %v119_v23 = vld [vmem:[%s1508_s3 + $0x90] sm:$0xff]  ;;  %v433_v35 = vunpack.c.0.s8 %v432_v31  ;;  %vm562_vm7 = vcmask 1041408   ;;  %vm564_vm8 = vcmask 1043456   ;;  %vm566_vm9 = vcmask 1045504  }
   0xd   :  { %984 = vmatprep.subr.mxu0 %v1161_v1  ;;  %1015 = vmatprep.subr.mxu1 %v1161_v1  ;;  %v24_v22 = vld [vmem:[%s1505_s0] sm:$0xff]  ;;  %v118_v24 = vld [vmem:[%s1508_s3 + $0x88] sm:$0xff]  ;;  %v415_v38 = vld [vmem:[%s1507_s2 + $0x10] sm:$0xff]  ;;  %s1166_s9 = smov 96   ;;  %s1167_s11 = smov [#allocation2]  }
   0xe   :  { %985 = vmatpush3.msra.mxu0 %v34_v11  ;;  %1016 = vmatpush3.msra.mxu1 %v120_v12  ;;  %v117_v25 = vld [vmem:[%s1508_s3 + $0x80] sm:$0xff]  ;;  %v1315_v26 = vld [vmem:[%s1506_s1 + $0x8] sm:$0xff]  ;;  %v1330_v37 = vsub.s32 %v433_v35, %v435_v32  ;;  %v505_v41 = vcombine.high %v415_v38, %v415_v38  ;;  %v237_v6 = vld [vmem:[%s1508_s3 + $0xf8] sm:$0xff]  ;;  %s873_s12 = sshll.u32 %s1167_s11, 4  ;;  %s874_s12 = int_to_ptr.vmem [resolvable:$true] %s873_s12 }
   0xf   :  { %986 = vmatprep.subr.mxu0 %v1161_v1  ;;  %1017 = vmatprep.subr.mxu1 %v1161_v1  ;;  %v205_v27 = vld [vmem:[%s1507_s2] sm:$0xff]  ;;  %v414_v33 = vld [vmem:[%s1507_s2 + $0x8] sm:$0xff]  ;;  %v236_v7 = vld [vmem:[%s1508_s3 + $0xf0] sm:$0xff]  ;;  %s1117_s13 = scalar_lea.vmem %s874_s12, 32  ;;  %p1122_p1 = scmp.lt.s32.totalorder %s874_s12, %s874_s12 }
  0x10   :  { %987 = vmatpush3.msra.mxu0 %v33_v13  ;;  %1018 = vmatpush3.msra.mxu1 %v119_v23  ;;  %v1328_v34 = vld [vmem:[%s1506_s1] sm:$0xff]  ;;  %v488_v36 = vcombine.high %v414_v33, %v414_v33  ;;  %v495_v39 = vrot.slane %v414_v33, %v1330_v37  ;;  %v512_v45 = vrot.slane %v415_v38, %v1330_v37  ;;  %v235_v8 = vld [vmem:[%s1508_s3 + $0xe8] sm:$0xff]  ;;  %v233_v10 = vld [vmem:[%s1508_s3 + $0xd8] sm:$0xff]  ;;  %p1118_p0 = scmp.ne.s32.totalorder %s874_s12, %s1117_s13  ;;  %p1123_p2 = scmp.lt.s32.totalorder %s1117_s13, %s1117_s13 }
  0x11   :  { %988 = vmatprep.subr.mxu0 %v1161_v1  ;;  %1019 = vmatprep.subr.mxu1 %v1161_v1  ;;  %v519_v50 = vrot.slane %v505_v41, %v1330_v37  ;;  %v897_v0 = vld [vmem:[%s1509_s4] ss:$0 sm:$0xff]  ;;  %v232_v11 = vld [vmem:[%s1508_s3 + $0xd0] sm:$0xff]  ;;  %v231_v12 = vld [vmem:[%s1508_s3 + $0xc8] sm:$0xff] }
  0x12   :  { %989 = vmatpush3.msra.mxu0 %v32_v14  ;;  %1020 = vmatpush3.msra.mxu1 %v118_v24  ;;  %v502_v40 = vrot.slane %v488_v36, %v1330_v37  ;;  %v503_v42 = vcombine.high %v495_v39, %v495_v39  ;;  %v531_v44 = vsel %vm530_vm1, %v495_v39, 0.0  ;;  %v520_v51 = vcombine.high %v512_v45, %v512_v45  ;;  %v234_v9 = vld [vmem:[%s1508_s3 + $0xe0] sm:$0xff]  ;;  %v327_v14 = vld [vmem:[%s1508_s3 + $0x138] sm:$0xff]  ;;  %p1124_p3 = por %p1123_p2, %p1122_p1 }
  0x13   :  { %990 = vmatprep.subr.mxu0 %v1161_v1  ;;  %1021 = vmatprep.subr.mxu1 %v1161_v1  ;;  %v538_v53 = vsel %vm530_vm1, %v512_v45, 0.0  ;;  %v521_v55 = vcombine.high %v519_v50, %v519_v50  ;;  %v542_v58 = vsel %vm530_vm1, %v519_v50, 0.0  ;;  %v230_v13 = vld [vmem:[%s1508_s3 + $0xc0] sm:$0xff]  ;;  %v322_v45 = vld [vmem:[%s1508_s3 + $0x110] sm:$0xff] }
  0x14   :  { %991 = vmatpush3.msra.mxu0 %v31_v15  ;;  %1022 = vmatpush3.msra.mxu1 %v117_v25  ;;  %v504_v43 = vcombine.high %v502_v40, %v502_v40  ;;  %v532_v46 = vsel %vm530_vm1, %v503_v42, 0.0  ;;  %v534_v47 = vsel %vm530_vm1, %v502_v40, 0.0  ;;  %v540_v56 = vsel %vm530_vm1, %v520_v51, 0.0  ;;  %v326_v15 = vld [vmem:[%s1508_s3 + $0x130] sm:$0xff]  ;;  %p1125_p4 = pnand %p1124_p3, %p1118_p0 }
  0x15   :  { %992 = vmatprep.subr.mxu0 %v1161_v1  ;;  %1026 = vmatprep.subr.mxu1 %v1161_v1  ;;  %v533_v48 = vadd.f32 %v532_v46, %v531_v44  ;;  %v544_v60 = vsel %vm530_vm1, %v521_v55, 0.0  ;;  %v321_v46 = vld [vmem:[%s1508_s3 + $0x108] sm:$0xff] }
  0x16   :  { %993 = vmatpush3.msra.mxu0 %v30_v16  ;;  %572 = vrot.lane.b32.xlu1 %v1315_v26, %s1163_s26  ;;  %v536_v49 = vsel %vm530_vm1, %v504_v43, 0.0  ;;  %v325_v16 = vld [vmem:[%s1508_s3 + $0x128] sm:$0xff] }
  0x17   :  { %994 = vmatprep.subr.mxu0 %v1161_v1  ;;  %1107 = vset.pattern.permute.xlu0 %v1164_v29  ;;  %v535_v52 = vadd.f32 %v534_v47, %v533_v48  ;;  %v320_v47 = vld [vmem:[%s1508_s3 + $0x100] sm:$0xff]  ;;  %v579_v55 = vld [vmem:[%s1508_s3 + $0x168] sm:$0xff] }
  0x18   :  { %995 = vmatpush3.msra.mxu0 %v29_v17  ;;  %1108 = vset.pattern.permute.xlu1 %v1164_v29  ;;  %v324_v17 = vld [vmem:[%s1508_s3 + $0x120] sm:$0xff] }
  0x19   :  { %996 = vmatprep.subr.mxu0 %v1161_v1  ;;  %208 = vperm.xlu0 %1107, %v205_v27   ;;  %v537_v54 = vadd.f32 %v536_v49, %v535_v52  ;;  %v900_v48 = vld [vmem:[%s1509_s4 + $0x2] ss:$0 sm:$0xff] }
  0x1a   :  { %997 = vmatpush3.msra.mxu0 %v28_v18  ;;  %418 = vperm.xlu1 %1108, %v414_v33   ;;  %v323_v18 = vld [vmem:[%s1508_s3 + $0x118] sm:$0xff] }
  0x1b   :  { %998 = vmatprep.subr.mxu0 %v1161_v1  ;;  %v539_v57 = vadd.f32 %v538_v53, %v537_v54  ;;  %v581_v53 = vld [vmem:[%s1508_s3 + $0x178] sm:$0xff]  ;;  %v580_v54 = vld [vmem:[%s1508_s3 + $0x170] sm:$0xff] }
  0x1c   :  { %999 = vmatpush3.msra.mxu0 %v27_v19  ;;  %v898_v19 = vld [vmem:[%s1509_s4 + $0x1] ss:$0 sm:$0xff] }
  0x1d   :  { %1000 = vmatprep.subr.mxu0 %v1161_v1  ;;  %570 = vrot.lane.b32.xlu0 %v1328_v34, %s1163_s26  ;;  %v541_v59 = vadd.f32 %v540_v56, %v539_v57  ;;  %v578_v56 = vld [vmem:[%s1508_s3 + $0x160] sm:$0xff]  ;;  %v1445_v57 = vld [vmem:[%s1508_s3 + $0x158] sm:$0xff] }
  0x1e   :  { %1001 = vmatpush3.msra.mxu0 %v26_v20  ;;  %423 = vperm.xlu1 %1108, %v415_v38  }
  0x1f   :  { %1002 = vmatprep.subr.mxu0 %v1161_v1  ;;  %v543_v61 = vadd.f32 %v542_v58, %v541_v59 }
  0x20   :  { %1003 = vmatpush3.msra.mxu0 %v25_v21 }
  0x21   :  { %1005 = vmatmul.mubr.f32.vlgmr.msra.gmra.mxu0 %v24_v22  ;;  %1045 = vmatprep.subr.mxu0 %v1161_v1  ;;  %v545_v62 = vadd.f32 %v544_v60, %v543_v61 }
  0x22   :  { %1061 = vmatprep.mubr.msk.f32.mxu0 %vm1162_vm0, %v1161_v1  ;;  %1046 = vmatpush3.msra.mxu0 %v327_v14 }
  0x23   :  { %v546_v63 = vadd.f32 1e-09, %v545_v62  ;;  %1047 = vmatprep.subr.mxu0 %v1161_v1  ;;  %v902_v62 = vld [vmem:[%s1509_s4 + $0x3] ss:$0 sm:$0xff] }
  0x24   :  { %1048 = vmatpush3.msra.mxu0 %v326_v15 }
  0x25   :  { %549 = vperm.xlu0 %1107, %v546_v63   ;;  %1049 = vmatprep.subr.mxu0 %v1161_v1 }
  0x26   :  { %1050 = vmatpush3.msra.mxu0 %v325_v16 }
  0x27   :  { %1051 = vmatprep.subr.mxu0 %v1161_v1 }
  0x28   :  { %1052 = vmatpush3.msra.mxu0 %v324_v17 }
  0x29   :  { %1053 = vmatprep.subr.mxu0 %v1161_v1 }
  0x2a   :  { %1054 = vmatpush3.msra.mxu0 %v323_v18 }
  0x2b   :  { %1055 = vmatprep.subr.mxu0 %v1161_v1 }
  0x2c   :  { %1056 = vmatpush3.msra.mxu0 %v322_v45 }
  0x2d   :  { %1057 = vmatprep.subr.mxu0 %v1161_v1 }
  0x2e   :  { %1058 = vmatpush3.msra.mxu0 %v321_v46 }
  0x2f   :  { %1059 = vmatprep.subr.mxu0 %v1161_v1 }
  0x30   :  { %1060 = vmatpush3.msra.mxu0 %v320_v47 }
  0x88   :  { %v1448_v58 = vpop.permute.xlu1 %572 }
  0x94   :  { %v209_v24 = vpop.permute.xlu0 %208 }
  0x95   :  { %v419_v59 = vpop.permute.xlu1 %418 }
  0x96   :  { %v426_v60 = vmul.f32 %v419_v59, %v1328_v34 }
  0x98   :  { %v437_v61 = vrot.slane %v426_v60, %v1330_v37 }
  0x99   :  { %v424_v34 = vpop.permute.xlu1 %423 }
  0x9a   :  { %v445_v63 = vcombine.high %v437_v61, %v437_v61 }
  0xe1   :  { %v112_v2 = vpop.f32.mrf.mxu0 }
  0xe2   :  { %v113_v3 = vadd.f32 %v897_v0, %v112_v2 }
  0xe3   :  { %v1006_v4 = vpop.f32.mrf.mxu0 }
  0xe4   :  { %v116_v5 = vmax.f32 %v113_v3, 0.0 }
  0xe6   :  { %1024 = vmatmul.mubr.msk.f32.vlgmr.msra.gmra.mxu1 %vm130_vm2, %v116_v5 }
  0xe7   :  { %1042 = vmatprep.mubr.msk.f32.mxu1 %vm1162_vm0, %v1161_v1  ;;  %1027 = vmatpush3.msra.mxu1 %v237_v6  ;;  %v473_v6 = vsel %vm472_vm5, %v437_v61, 0.0 }
  0xe8   :  { %1028 = vmatprep.subr.mxu1 %v1161_v1 }
  0xe9   :  { %1029 = vmatpush3.msra.mxu1 %v236_v7  ;;  %v474_v7 = vsel %vm472_vm5, %v445_v63, 0.0 }
  0xea   :  { %1030 = vmatprep.subr.mxu1 %v1161_v1 }
  0xeb   :  { %1031 = vmatpush3.msra.mxu1 %v235_v8 }
  0xec   :  { %1032 = vmatprep.subr.mxu1 %v1161_v1 }
  0xed   :  { %1033 = vmatpush3.msra.mxu1 %v234_v9  ;;  %v475_v9 = vadd.f32 %v474_v7, %v473_v6 }
  0xee   :  { %1034 = vmatprep.subr.mxu1 %v1161_v1 }
  0xef   :  { %1035 = vmatpush3.msra.mxu1 %v233_v10 }
  0xf0   :  { %1036 = vmatprep.subr.mxu1 %v1161_v1 }
  0xf1   :  { %1037 = vmatpush3.msra.mxu1 %v232_v11 }
  0xf2   :  { %1038 = vmatprep.subr.mxu1 %v1161_v1 }
  0xf3   :  { %1039 = vmatpush3.msra.mxu1 %v231_v12  ;;  %v427_v12 = vmul.f32 %v424_v34, %v1315_v26 }
  0xf4   :  { %1040 = vmatprep.subr.mxu1 %v1161_v1 }
  0xf5   :  { %1041 = vmatpush3.msra.mxu1 %v230_v13  ;;  %v571_v13 = vpop.permute.xlu0 %570  ;;  %v454_v16 = vrot.slane %v427_v12, %v1330_v37 }
  0xf6   :  { %1064 = vmatprep.subr.mxu1 %v1161_v1 }
  0xf9   :  { %v550_v18 = vpop.permute.xlu0 %549 }
 0x1a6   :  { %v200_v20 = vpop.f32.mrf.mxu1 }
 0x1a7   :  { %v201_v21 = vadd.f32 %v898_v19, %v200_v20  ;;  %v447_v19 = vcombine.high %v427_v12, %v427_v12  ;;  %v462_v20 = vcombine.high %v454_v16, %v454_v16 }
 0x1a8   :  { %v1025_v22 = vpop.f32.mrf.mxu1 }
 0x1a9   :  { %v204_v23 = vmax.f32 %v201_v21, 0.0  ;;  %v480_v21 = vsel %vm472_vm5, %v454_v16, 0.0 }
 0x1ab   :  { %v211_v25 = vmul.f32 %v209_v24, %v204_v23  ;;  %v461_v24 = vrot.slane %v447_v19, %v1330_v37 }
 0x1ad   :  { %v213_v27 = vcombine.high %v211_v25, %v211_v25  ;;  %v216_v28 = vsel %vm215_vm3, %v211_v25, 0.0  ;;  %v482_v25 = vsel %vm472_vm5, %v462_v20, 0.0 }
 0x1ae   :  { %v217_v29 = vrot.slane %v216_v28, 4 }
 0x1af   :  { %v223_v30 = vsel %vm215_vm3, %v213_v27, 0.0 }
 0x1b0   :  { %v218_v31 = vadd.f32 %v217_v29, %v216_v28  ;;  %v224_v32 = vrot.slane %v223_v30, 4  ;;  %v463_v28 = vcombine.high %v461_v24, %v461_v24  ;;  %v484_v29 = vsel %vm472_vm5, %v461_v24, 0.0 }
 0x1b2   :  { %v219_v33 = vrot.slane %v218_v31, 2  ;;  %v225_v35 = vadd.f32 %v224_v32, %v223_v30 }
 0x1b4   :  { %v220_v36 = vadd.f32 %v219_v33, %v218_v31  ;;  %v226_v38 = vrot.slane %v225_v35, 2  ;;  %v486_v31 = vsel %vm472_vm5, %v463_v28, 0.0 }
 0x1b6   :  { %v221_v39 = vrot.slane %v220_v36, 1  ;;  %v227_v40 = vadd.f32 %v226_v38, %v225_v35 }
 0x1b8   :  { %v228_v41 = vrot.slane %v227_v40, 1  ;;  %v222_v42 = vadd.f32 %v221_v39, %v220_v36 }
 0x1ba   :  { %v229_v43 = vadd.f32 %v228_v41, %v227_v40  ;;  %v663_v40 = vld [vmem:[%s1508_s3 + $0x150] sm:$0xff] }
 0x1bc   :  { %v246_v44 = vsel %vm245_vm4, %v229_v43, %v222_v42 }
 0x1bd   :  { %1043 = vmatmul.mubr.msk.f32.vlgmr.msra.gmra.mxu1 %vm130_vm2, %v246_v44  ;;  %v662_v44 = vld [vmem:[%s1508_s3 + $0x148] sm:$0xff] }
 0x1be   :  { %1072 = vmatprep.mubr.msk.f32.mxu1 %vm1162_vm0, %v1161_v1  ;;  %1065 = vmatpush3.msra.mxu1 %v581_v53 }
 0x1bf   :  { %1066 = vmatprep.subr.mxu1 %v1161_v1 }
 0x1c0   :  { %1067 = vmatpush3.msra.mxu1 %v580_v54 }
 0x1c1   :  { %1068 = vmatprep.subr.mxu1 %v1161_v1 }
 0x1c2   :  { %1069 = vmatpush3.msra.mxu1 %v579_v55 }
 0x1c3   :  { %1070 = vmatprep.subr.mxu1 %v1161_v1  ;;  %v430_v1 = vcombine.high %v426_v60, %v426_v60 }
 0x1c4   :  { %1071 = vmatpush3.msra.mxu1 %v578_v56 }
 0x1c5   :  { %1075 = vmatprep.subr.mxu1 %v1445_v57  ;;  %v444_v5 = vrot.slane %v430_v1, %v1330_v37 }
 0x1c7   :  { %v446_v10 = vcombine.high %v444_v5, %v444_v5  ;;  %v476_v11 = vsel %vm472_vm5, %v444_v5, 0.0 }
 0x1c8   :  { %v477_v14 = vadd.f32 %v476_v11, %v475_v9 }
 0x1c9   :  { %v478_v15 = vsel %vm472_vm5, %v446_v10, 0.0 }
 0x1ca   :  { %v479_v17 = vadd.f32 %v478_v15, %v477_v14 }
 0x1cc   :  { %v481_v22 = vadd.f32 %v480_v21, %v479_v17 }
 0x1ce   :  { %v483_v27 = vadd.f32 %v482_v25, %v481_v22 }
 0x1d0   :  { %v485_v30 = vadd.f32 %v484_v29, %v483_v27 }
 0x1d2   :  { %v487_v32 = vadd.f32 %v486_v31, %v485_v30 }
 0x27d   :  { %v315_v49 = vpop.f32.mrf.mxu1 }
 0x27e   :  { %v316_v50 = vadd.f32 %v900_v48, %v315_v49  ;;  %v661_v48 = vld [vmem:[%s1508_s3 + $0x140] sm:$0xff] }
 0x27f   :  { %v1044_v51 = vpop.f32.mrf.mxu1 }
 0x280   :  { %v319_v52 = vmax.f32 %v316_v50, 0.0 }
 0x282   :  { %1062 = vmatmul.mubr.msk.f32.vlgmr.msra.gmra.mxu0 %vm130_vm2, %v319_v52 }
 0x342   :  { %v402_v0 = vpop.f32.mrf.mxu0 }
 0x343   :  { %v403_v2 = vadd.f32 %v902_v62, %v402_v0 }
 0x344   :  { %v1063_v3 = vpop.f32.mrf.mxu0 }
 0x345   :  { %v406_v4 = vsub.f32 0.0, %v403_v2 }
 0x347   :  { %v407_v8 = vmul.f32 1.442695, %v406_v4 }
 0x349   :  { %1111 = vpow2.f32 %v407_v8 }
 0x34a   :  { %1113 = vrcp.f32 %v550_v18 }
 0x356   :  { %v1112_v23 = vpop.eup %1111 }
 0x357   :  { %v409_v26 = vadd.f32 1.0, %v1112_v23  ;;  %v1114_v33 = vpop.eup %1113 }
 0x358   :  { %v553_v35 = vmul.f32 %v1114_v33, %v487_v32 }
 0x359   :  { %1115 = vrcp.f32 %v409_v26 }
 0x366   :  { %v1116_v36 = vpop.eup %1115 }
 0x367   :  { %v554_v38 = vmul.f32 %v1116_v36, %v553_v35  ;;  %v556_v39 = vrot.slane %v1116_v36, 6  ;;  %v558_v37 = vrot.slane %v1116_v36, 4  ;;  %v560_v41 = vrot.slane %v1116_v36, 2 }
 0x369   :  { %1073 = vmatmul.mubr.msk.f32.vlgmr.msra.gmra.mxu1 %vm587_vm6, %v554_v38  ;;  %864 = vst.msk [vmem:[#allocation2] sm:$0x3] %vm472_vm5, %v554_v38  ;;  %v563_v42 = vsel %vm562_vm7, %v1116_v36, %v556_v39 }
 0x36a   :  { %v565_v43 = vsel %vm564_vm8, %v563_v42, %v558_v37  ;;  %1076 = vmatpush3.msra.mxu1 %v1445_v57 }
 0x36b   :  { %v567_v45 = vsel %vm566_vm9, %v565_v43, %v560_v41  ;;  %1077 = vmatprep.subr.mxu1 %v663_v40 }
 0x36c   :  { %v577_v46 = vmul.f32 %v1448_v58, %v567_v45  ;;  %v576_v47 = vmul.f32 %v571_v13, %v567_v45  ;;  %1078 = vmatpush3.msra.mxu1 %v663_v40 }
 0x36d   :  { %1079 = vmatprep.subr.mxu1 %v662_v44 }
 0x36e   :  { %679 = vrot.lane.b32.xlu1 %v577_v46, %s1166_s9  ;;  %677 = vrot.lane.b32.xlu0 %v576_v47, %s1166_s9 }
 0x36f   :  { %1080 = vmatpush3.msra.mxu1 %v662_v44 }
 0x370   :  { %1081 = vmatprep.subr.mxu1 %v661_v48 }
 0x371   :  { %1082 = vmatpush3.msra.mxu1 %v661_v48 }
 0x372   :  { %777 = vrot.lane.b32.xlu0 %v1445_v57, %s1166_s9  ;;  %775 = vrot.lane.b32.xlu1 %v663_v40, %s1166_s9  ;;  %v904_v57 = vld [vmem:[%s1509_s4 + $0x4] ss:$0 sm:$0xff] }
 0x376   :  { %773 = vrot.lane.b32.xlu0 %v662_v44, %s1166_s9  ;;  %771 = vrot.lane.b32.xlu1 %v661_v48, %s1166_s9 }
 0x3e0   :  { %v680_v49 = vpop.permute.xlu1 %679  ;;  %v678_v50 = vpop.permute.xlu0 %677 }
 0x3e1   :  { %1083 = vmatprep.mubr.msk.f32.mxu1 %vm587_vm6, %v678_v50 }
 0x3e2   :  { %1084 = vmatmul.mubr.msk.f32.vlgmr.msra.gmra.mxu1 %vm587_vm6, %v680_v49 }
 0x3e4   :  { %v778_v51 = vpop.permute.xlu0 %777  ;;  %v776_v52 = vpop.permute.xlu1 %775 }
 0x3e5   :  { %1086 = vmatprep.subr.mxu0 %v778_v51 }
 0x3e6   :  { %1087 = vmatpush3.msra.mxu0 %v778_v51 }
 0x3e7   :  { %1088 = vmatprep.subr.mxu0 %v776_v52 }
 0x3e8   :  { %1089 = vmatpush3.msra.mxu0 %v776_v52  ;;  %v774_v53 = vpop.permute.xlu0 %773  ;;  %v772_v54 = vpop.permute.xlu1 %771 }
 0x3e9   :  { %1090 = vmatprep.subr.mxu0 %v774_v53 }
 0x3ea   :  { %1091 = vmatpush3.msra.mxu0 %v774_v53 }
 0x3eb   :  { %1092 = vmatprep.subr.mxu0 %v772_v54 }
 0x3ec   :  { %1093 = vmatpush3.msra.mxu0 %v772_v54 }
 0x429   :  { %v657_v55 = vpop.f32.mrf.mxu1 }
 0x42a   :  { %v658_v58 = vadd.f32 %v904_v57, %v657_v55 }
 0x42b   :  { %v1074_v56 = vpop.f32.mrf.mxu1 }
 0x42c   :  { %v666_v59 = vrot.slane %v658_v58, 6  ;;  %v668_v60 = vrot.slane %v658_v58, 4  ;;  %v670_v1 = vrot.slane %v658_v58, 2 }
 0x42e   :  { %v672_v61 = vsel %vm562_vm7, %v658_v58, %v666_v59 }
 0x42f   :  { %v673_v62 = vsel %vm564_vm8, %v672_v61, %v668_v60 }
 0x430   :  { %v674_v0 = vsel %vm566_vm9, %v673_v62, %v670_v1 }
 0x4a2   :  { %v1085_v63 = vpop.f32.mrf.mxu1 }
 0x4a3   :  { %v757_v2 = vadd.f32 %v1085_v63, %v674_v0 }
 0x4a4   :  { %v751_v3 = vpop.f32.mrf.mxu1 }
 0x4a5   :  { %v752_v4 = vadd.f32 %v751_v3, %v674_v0  ;;  %v761_v6 = vmax.f32 %v757_v2, 0.0 }
 0x4a7   :  { %v760_v5 = vmax.f32 %v752_v4, 0.0 }
 0x4a9   :  { %1094 = vmatprep.mubr.msk.f32.mxu0 %vm587_vm6, %v760_v5 }
 0x4aa   :  { %1095 = vmatmul.mubr.msk.f32.vlgmr.msra.gmra.mxu0 %vm587_vm6, %v761_v6 }
 0x4ab   :  { %1128 = shalt.err (!%p1125_p4)
}
 0x4ac   :  { %876 = dma.vmem_to_hbm [thread:$0]  %s874_s12, 32, %s1510_s5, [#allocation3]   ;;  %v908_v7 = vld [vmem:[%s1509_s4 + $0x5] ss:$0 sm:$0xff] }
 0x4ad   :  { %s1168_s18 = smov [#allocation4]  }
 0x4ae   :  { %s882_s19 = sshll.u32 %s1168_s18, 4  ;;  %s883_s19 = int_to_ptr.vmem [resolvable:$true] %s882_s19 }
 0x4af   :  { %s1137_s20 = scalar_lea.vmem %s883_s19, 256  ;;  %p1142_p6 = scmp.lt.s32.totalorder %s883_s19, %s883_s19 }
 0x4b0   :  { %p1138_p5 = scmp.ne.s32.totalorder %s883_s19, %s1137_s20  ;;  %p1143_p7 = scmp.lt.s32.totalorder %s1137_s20, %s1137_s20 }
 0x4b2   :  { %p1144_p8 = por %p1143_p7, %p1142_p6 }
 0x4b4   :  { %p1145_p9 = pnand %p1144_p8, %p1138_p5 }
 0x56a   :  { %v1096_v34 = vpop.f32.mrf.mxu0 }
 0x56b   :  { %v861_v8 = vadd.f32 %v1096_v34, %v908_v7 }
 0x56c   :  { %v855_v9 = vpop.f32.mrf.mxu0 }
 0x56d   :  { %866 = vst.msk [vmem:[#allocation4 + $0x8] sm:$0xff] %vm587_vm6, %v861_v8  ;;  %v856_v10 = vadd.f32 %v908_v7, %v855_v9 }
 0x56f   :  { %865 = vst.msk [vmem:[#allocation4] sm:$0xff] %vm587_vm6, %v856_v10 }
 0x570   :  { %1148 = shalt.err (!%p1145_p9)
}
 0x571   :  { %s1169_s5 = smov 128   ;;  %s1170_s4 = smov 8  }
 0x572   :  { %888 = dma.vmem_to_hbm [thread:$0]  %s883_s19, 256, %s1511_s6, [#allocation5], %s1169_s5, %s1169_s5, %s1170_s4  }
 0x573   :  { %1157 = dma.done.wait [#allocation3], 32  }
 0x574   :  { %1158 = vsyncadd [#allocation3], 4294967264 }
 0x575   :  { %1159 = dma.done.wait [#allocation5], 256  }
 0x576   :  { %1160 = vsyncadd [#allocation5], 4294967040 }
 0x577   :  { %895 = vsyncpa [#allocation3], 1 }
 0x578   :  { %896 = vsyncpa [#allocation5], 1 }

</bundles_post_ra>
